<compile_context>
chip_gen: v7x
topology: tpu7x:2x2x1
jax: 0.10.0
libtpu: 0.0.40
codegen_flags: <defaults>
</compile_context>

<pallas_src>
import functools

import numpy as np
import jax
import jax.numpy as jnp
from jax.experimental import pallas as pl
from jax.experimental.pallas import tpu as pltpu


def dct_mat_coeff(L=8):
    C = np.zeros((L, L), dtype=np.float64)
    for k in range(L):
        for n in range(L):
            if k == 0:
                C[k, n] = np.sqrt(1.0 / L)
            else:
                C[k, n] = np.sqrt(2.0 / L) * np.cos(np.pi * k * (0.5 + n) / L)
    return C


def _round_up(a, b):
    return (a + b - 1) // b * b


def _idct_matmul_kernel(k_ref, x_ref, o_ref):
    # k_ref: VMEM (LANE, LANE)  block-diagonal kron(C_col, C_row) basis.
    # x_ref: VMEM (TM, LANE)    flattened (u,v)-major coefficients, P blocks/row.
    # o_ref: VMEM (TM, LANE)    flattened (r,s)-major spatial samples.
    o_ref[...] = jnp.dot(
        x_ref[...],
        k_ref[...],
        preferred_element_type=jnp.float32,
        precision=jax.lax.Precision.HIGHEST,
    ).astype(o_ref.dtype)


@functools.partial(jax.jit, static_argnames=("block_size", "max_rows_per_tile"))
def block_idct(x, block_size=(8, 8), max_rows_per_tile=2048):
    """x: (B, C*bh*bw, NH, NW) float. Returns (B, C, NH*bh, NW*bw)."""
    B, CHW, NH, NW = x.shape
    bh, bw = block_size
    L = bh * bw
    C = CHW // L
    assert C * L == CHW, "channel dim must be C * bh * bw"
    H, W = NH * bh, NW * bw

    # 2-D IDCT of one (bh, bw) block == flat(coeffs) @ kron(C_col, C_row).
    k_np = np.kron(dct_mat_coeff(bh), dct_mat_coeff(bw))  # (L, L), float64

    # Pack P blocks per kernel row so the lane axis is 128 wide (unmasked vst).
    P = 128 // L if (L <= 128 and 128 % L == 0) else 1
    lane = P * L
    k2_np = np.zeros((lane, lane), dtype=np.float32)
    for p in range(P):
        k2_np[p * L:(p + 1) * L, p * L:(p + 1) * L] = k_np
    k2 = jnp.asarray(k2_np)

    # Gather coefficients into block-major layout (M, L), M = B*C*NH*NW.
    # CHW axis ordering is (u, v, ch) with ch fastest -> reshape to (L, C).
    coef = x.reshape(B, L, C, NH, NW).astype(jnp.float32)
    coef = jnp.transpose(coef, (0, 2, 3, 4, 1)).reshape(-1, L)  # (M, L)
    M = B * C * NH * NW

    # Row tiling: as large as possible (amortize per-step overhead) but split
    # small problems into >=2 tiles so both v7x TensorCores are fed.
    rows = pl.cdiv(M, P)
    n_tiles = max(2, pl.cdiv(rows, max_rows_per_tile))
    tm = max(8, _round_up(pl.cdiv(rows, n_tiles), 8))
    grid_m = pl.cdiv(rows, tm)
    rows_p = grid_m * tm
    mp = rows_p * P

    if mp != M:
        coef = jnp.pad(coef, ((0, mp - M), (0, 0)))
    coef = coef.reshape(rows_p, lane)

    out = pl.pallas_call(
        _idct_matmul_kernel,
        out_shape=jax.ShapeDtypeStruct((rows_p, lane), jnp.float32),
        grid_spec=pltpu.PrefetchScalarGridSpec(
            num_scalar_prefetch=0,
            grid=(grid_m,),
            in_specs=[
                pl.BlockSpec((lane, lane), lambda i: (0, 0)),  # basis (VMEM resident)
                pl.BlockSpec((tm, lane), lambda i: (i, 0)),
            ],
            out_specs=pl.BlockSpec((tm, lane), lambda i: (i, 0)),
        ),
        compiler_params=pltpu.CompilerParams(
            dimension_semantics=("parallel",),
        ),
    )(k2, coef)

    # Scatter blocks back into image layout (equivalent of F.fold w/ stride=kernel).
    y = out.reshape(mp, L)[:M]
    y = y.reshape(B, C, NH, NW, bh, bw)
    y = jnp.transpose(y, (0, 1, 2, 4, 3, 5)).reshape(B, C, H, W)
    return y.astype(x.dtype)


def _reference_np(x_np, block_size=(8, 8)):
    """float64 numpy reference mirroring the torch module's math."""
    B, CHW, NH, NW = x_np.shape
    bh, bw = block_size
    L = bh * bw
    C = CHW // L
    Cc = dct_mat_coeff(bh)
    Cr = dct_mat_coeff(bw)
    coef = x_np.astype(np.float64).reshape(B, bh, bw, C, NH, NW)
    # out[b,c,i,r,j,s] = sum_{u,v} Cc[u,r] * coef[b,u,v,c,i,j] * Cr[v,s]
    y = np.einsum("ur,buvcij,vs->bcirjs", Cc, coef, Cr)
    return y.reshape(B, C, NH * bh, NW * bw)


if __name__ == "__main__":
    key = jax.random.PRNGKey(0)
    B, C, NH, NW = 2, 3, 4, 4          # small: x (2, 192, 4, 4) -> out (2, 3, 32, 32)
    bh, bw = 8, 8
    x = jax.random.normal(key, (B, C * bh * bw, NH, NW), dtype=jnp.float32) * 16.0

    y = block_idct(x, block_size=(bh, bw))
    y = jax.block_until_ready(y)

    ref = _reference_np(np.asarray(x), (bh, bw))
    assert y.shape == (B, C, NH * bh, NW * bw), y.shape
    err = float(np.max(np.abs(np.asarray(y, dtype=np.float64) - ref)))
    assert np.allclose(np.asarray(y), ref, atol=2e-3, rtol=1e-4), err
    print("KERNEL_OK")
</pallas_src>

<mosaic_0001>
module attributes {stable_mosaic.version = 11 : i64} {
  func.func @_idct_matmul_kernel(%arg0: i32, %arg1: memref<128x128xf32, #tpu.memory_space<vmem>>, %arg2: memref<24x128xf32, #tpu.memory_space<vmem>>, %arg3: memref<24x128xf32, #tpu.memory_space<vmem>>) attributes {dimension_semantics = [#tpu.dimension_semantics<parallel>], iteration_bounds = array<i64: 2>, scalar_prefetch = 0 : i64, scratch_operands = 0 : i64, tpu.core_type = #tpu.core_type<tc>, window_params = [{pipeline_mode = #tpu.pipeline_mode<synchronous>, transform_indices = @transform_0, window_bounds = array<i64: 128, 128>}, {transform_indices = @transform_1, window_bounds = array<i64: 24, 128>}, {transform_indices = @transform_2, window_bounds = array<i64: 24, 128>}]} {
    %c0 = arith.constant 0 : index
    %c0_0 = arith.constant 0 : index
    %0 = vector.load %arg2[%c0, %c0_0] : memref<24x128xf32, #tpu.memory_space<vmem>>, vector<24x128xf32>
    %c0_1 = arith.constant 0 : index
    %c0_2 = arith.constant 0 : index
    %1 = vector.load %arg1[%c0_1, %c0_2] : memref<128x128xf32, #tpu.memory_space<vmem>>, vector<128x128xf32>
    %cst = arith.constant dense<0.000000e+00> : vector<24x128xf32>
    %2 = tpu.matmul %0, %1, %cst {dimension_numbers = #tpu.dot_dimension_numbers<[1], [0], [0], [1], [0, 0, 1, 1], [], []>, precision = #tpu.contract_precision<fp32>} : vector<24x128xf32>, vector<128x128xf32>, vector<24x128xf32> -> vector<24x128xf32>
    %c0_3 = arith.constant 0 : index
    %c0_4 = arith.constant 0 : index
    %3 = vector.load %arg3[%c0_3, %c0_4] : memref<24x128xf32, #tpu.memory_space<vmem>>, vector<24x128xf32>
    tpu.vector_store %arg3[%c0_3, %c0_4], %2 {strides = array<i32>} : memref<24x128xf32, #tpu.memory_space<vmem>>, vector<24x128xf32>,
    return
  }
  func.func @transform_0(%arg0: i32) -> (i32, i32) {
    %c0_i32 = arith.constant 0 : i32
    %c0_i32_0 = arith.constant 0 : i32
    %c0_i32_1 = arith.constant 0 : i32
    return %c0_i32, %c0_i32_0 : i32, i32
  }
  func.func @transform_1(%arg0: i32) -> (i32, i32) {
    %c0_i32 = arith.constant 0 : i32
    %c0_i32_0 = arith.constant 0 : i32
    return %arg0, %c0_i32 : i32, i32
  }
  func.func @transform_2(%arg0: i32) -> (i32, i32) {
    %c0_i32 = arith.constant 0 : i32
    %c0_i32_0 = arith.constant 0 : i32
    return %arg0, %c0_i32 : i32, i32
  }
}

</mosaic_0001>

<bundles_post_ra>
// kernel: block_idct.1
= control target key start
LH: loop header
LB: loop body
LE: loop exit
PB: predicated region body
PF: predicated region fallthrough
CT: control target
= control target key end

     0   :  { %s1529_s9 = smov 0   ;;  %s1931_s0 = inlined_call_operand.vmem [shape: f32[128,128], index: 0, kind: input, shape index: {}]   ;;  %s1932_s1 = inlined_call_operand.vmem [shape: f32[48,128], index: 1, kind: input, shape index: {}]   ;;  %s1933_s2 = inlined_call_operand.vmem [shape: f32[48,128], index: 2, kind: output, shape index: {}]  }
   0x1 LB: > { %s952_s10 = sadd.s32 4294967295, %s1509_s9   ;;  %p956_p0 = scmp.ge.s32.totalorder %s1509_s9, 1  ;;  %s1509_s9 = sphi %s1529_s9, %s12_s9  }
   0x2   : > { %p113_p1 = scmp.lt.s32.totalorder %s1509_s9, 3 }
   0x4   : > { %p114_p2 = pnand %p956_p0, %p113_p1 }
   0x5   : > { %v150_v0 = vld [vmem:[%s1931_s0] sm:$0xff] (!%p114_p2)  ;;  %v151_v1 = vld [vmem:[%s1931_s0 + $0x8] sm:$0xff] (!%p114_p2)  ;;  %v152_v2 = vld [vmem:[%s1931_s0 + $0x10] sm:$0xff] (!%p114_p2)  ;;  %v1511_v3 = vmov (!%p114_p2), 0.0|0.0   ;;  %vm1512_vm0 = vmmov (!%p114_p2), 0   ;;  %v1513_v11 = vmov (!%p114_p2), 0.0  }
   0x6   : > { %117 = sbr.rel (%p114_p2) target bundleno = 328 (0x148), region = 28  ;;  %1321 = vmatprep.subr.bf16.mxu1 (!%p114_p2), %v1511_v3  ;;  %1393 = vmatprep.subr.bf16.mxu0 (!%p114_p2), %v1511_v3  ;;  %v167_v4 = vand.u32 (!%p114_p2), 4294901760, %v150_v0  ;;  %v170_v5 = vand.u32 (!%p114_p2), 4294901760, %v151_v1  ;;  %v153_v6 = vld [vmem:[%s1931_s0 + $0x18] sm:$0xff] (!%p114_p2)  ;;  %v173_v7 = vand.u32 (!%p114_p2), 4294901760, %v152_v2  ;;  %v1554_v9 = vld [vmem:[%s1931_s0 + $0x20] sm:$0xff] (!%p114_p2) }
   0x7   : > { %v176_v8 = vand.u32 (!%p114_p2), 4294901760, %v153_v6  ;;  %v1559_v10 = vld [vmem:[%s1931_s0 + $0x28] sm:$0xff] (!%p114_p2)  ;;  %1107 = vmatprep.mubr.msk.f32.mxu1 (!%p114_p2), %vm1512_vm0, %v1513_v11  ;;  %1230 = vmatprep.mubr.msk.f32.mxu0 (!%p114_p2), %vm1512_vm0, %v1513_v11  ;;  %s135_s23 = smul.u32 (!%p114_p2), 3, %s952_s10  ;;  %v179_v14 = vand.u32 (!%p114_p2), 4294901760, %v1554_v9  ;;  %v1578_v16 = vld [vmem:[%s1931_s0 + $0x30] sm:$0xff] (!%p114_p2)  ;;  %v1583_v17 = vld [vmem:[%s1931_s0 + $0x38] sm:$0xff] (!%p114_p2) }
   0x8   : > { %v1565_v12 = vpack.c.bf16 (!%p114_p2), %v170_v5, %v167_v4  ;;  %v182_v15 = vand.u32 (!%p114_p2), 4294901760, %v1559_v10  ;;  %v185_v19 = vand.u32 (!%p114_p2), 4294901760, %v1578_v16  ;;  %v188_v20 = vand.u32 (!%p114_p2), 4294901760, %v1583_v17  ;;  %v1599_v21 = vld [vmem:[%s1931_s0 + $0x40] sm:$0xff] (!%p114_p2)  ;;  %v1604_v22 = vld [vmem:[%s1931_s0 + $0x48] sm:$0xff] (!%p114_p2)  ;;  %v1629_v27 = vld [vmem:[%s1931_s0 + $0x50] sm:$0xff] (!%p114_p2) }
   0x9   : > { %v1569_v13 = vpack.c.bf16 (!%p114_p2), %v176_v8, %v173_v7  ;;  %p136_p3 = scmp.lt.s32.totalorder (!%p114_p2), %s135_s23, 5  ;;  %v191_v24 = vand.u32 (!%p114_p2), 4294901760, %v1599_v21  ;;  %v194_v25 = vand.u32 (!%p114_p2), 4294901760, %v1604_v22  ;;  %v1634_v28 = vld [vmem:[%s1931_s0 + $0x58] sm:$0xff] (!%p114_p2)  ;;  %v1636_v29 = vsub.f32 (!%p114_p2), %v150_v0, %v167_v4  ;;  %v1655_v35 = vld [vmem:[%s1931_s0 + $0x60] sm:$0xff] (!%p114_p2)  ;;  %v1662_v36 = vld [vmem:[%s1931_s0 + $0x68] sm:$0xff] (!%p114_p2) }
   0xa   : > { %1323 = vmatpush3.bf16.msra.mxu1 (!%p114_p2), %v1565_v12  ;;  %1395 = vmatpush3.bf16.msra.mxu0 (!%p114_p2), %v1565_v12  ;;  %v1589_v18 = vpack.c.bf16 (!%p114_p2), %v182_v15, %v179_v14  ;;  %v1619_v23 = vpack.c.bf16 (!%p114_p2), %v188_v20, %v185_v19  ;;  %v1640_v31 = vsub.f32 (!%p114_p2), %v151_v1, %v170_v5  ;;  %v197_v33 = vand.u32 (!%p114_p2), 4294901760, %v1629_v27  ;;  %v1673_v41 = vld [vmem:[%s1931_s0 + $0x70] sm:$0xff] (!%p114_p2)  ;;  %v1690_v45 = vld [vmem:[%s1931_s0 + $0x78] sm:$0xff] (!%p114_p2) }
   0xb   : > { %1324 = vmatprep.subr.bf16.mxu1 (!%p114_p2), %v1511_v3  ;;  %1396 = vmatprep.subr.bf16.mxu0 (!%p114_p2), %v1511_v3  ;;  %v1648_v32 = vpack.c.bf16 (!%p114_p2), %v194_v25, %v191_v24  ;;  %v200_v34 = vand.u32 (!%p114_p2), 4294901760, %v1634_v28  ;;  %v1664_v37 = vsub.f32 (!%p114_p2), %v152_v2, %v173_v7  ;;  %v1667_v39 = vsub.f32 (!%p114_p2), %v153_v6, %v176_v8 }
   0xc   : > { %v203_v40 = vand.u32 (!%p114_p2), 4294901760, %v1655_v35  ;;  %v206_v44 = vand.u32 (!%p114_p2), 4294901760, %v1662_v36  ;;  %v280_v46 = vand.u32 (!%p114_p2), 4294901760, %v1636_v29  ;;  %v287_v47 = vand.u32 (!%p114_p2), 4294901760, %v1640_v31 }
   0xd   : > { %s1935_s23 = smov (!%p136_p3, %s135_s23), 5  ;;  %v1684_v43 = vpack.c.bf16 %v200_v34, %v197_v33  ;;  %v1700_v50 = vsub.f32 %v1554_v9, %v179_v14  ;;  %v1703_v51 = vsub.f32 %v1559_v10, %v182_v15  ;;  %v209_v52 = vand.u32 4294901760, %v1673_v41 }
   0xe   : > { %1326 = vmatpush3.bf16.msra.mxu1 %v1569_v13  ;;  %1398 = vmatpush3.bf16.msra.mxu0 %v1569_v13  ;;  %s957_s28 = sshll.u32 %s1935_s23, 3  ;;  %v294_v53 = vand.u32 4294901760, %v1664_v37  ;;  %v212_v54 = vand.u32 4294901760, %v1690_v45  ;;  %v301_v56 = vand.u32 4294901760, %v1667_v39  ;;  %v1719_v58 = vpack.c.bf16 %v206_v44, %v203_v40 }
   0xf   : > { %1327 = vmatprep.subr.bf16.mxu1 %v1511_v3  ;;  %1399 = vmatprep.subr.bf16.mxu0 %v1511_v3  ;;  %s1611_s7 = scalar_lea.vmem %s1932_s1, %s957_s28  ;;  %v281_v59 = vsub.f32 %v1636_v29, %v280_v46  ;;  %v288_v60 = vsub.f32 %v1640_v31, %v287_v47  ;;  %v1730_v62 = vsub.f32 %v1578_v16, %v185_v19  ;;  %v308_v1 = vand.u32 4294901760, %v1700_v50  ;;  %s145_s24 = scalar_lea.vmem %s1933_s2, %s957_s28 }
  0x10   : > { %v147_v26 = vld [vmem:[%s1611_s7] sm:$0xff]  ;;  %v148_v38 = vld [vmem:[%s1611_s7 + $0x8] sm:$0xff]  ;;  %v149_v49 = vld [vmem:[%s1611_s7 + $0x10] sm:$0xff]  ;;  %v1735_v63 = vsub.f32 %v1583_v17, %v188_v20  ;;  %v295_v0 = vsub.f32 %v1664_v37, %v294_v53  ;;  %v302_v4 = vsub.f32 %v1667_v39, %v301_v56  ;;  %v1751_v7 = vpack.c.bf16 %v212_v54, %v209_v52 }
  0x11   : > { %v1638_v30 = vand.u32 4294901760, %v147_v26  ;;  %v1696_v48 = vand.u32 4294901760, %v148_v38  ;;  %v1723_v61 = vand.u32 4294901760, %v149_v49  ;;  %v282_v8 = vand.u32 4294901760, %v281_v59 }
  0x12   : > { %1329 = vmatpush3.bf16.msra.mxu1 %v1589_v18  ;;  %1401 = vmatpush3.bf16.msra.mxu0 %v1589_v18  ;;  %v289_v9 = vand.u32 4294901760, %v288_v60  ;;  %v315_v10 = vand.u32 4294901760, %v1703_v51  ;;  %v1757_v14 = vsub.f32 %v1599_v21, %v191_v24  ;;  %v1764_v15 = vsub.f32 %v1604_v22, %v194_v25 }
  0x13   : > { %1330 = vmatprep.subr.bf16.mxu1 %v1511_v3  ;;  %1402 = vmatprep.subr.bf16.mxu0 %v1511_v3  ;;  %v1676_v42 = vsub.f32 %v147_v26, %v1638_v30  ;;  %v1711_v57 = vsub.f32 %v148_v38, %v1696_v48  ;;  %v1743_v6 = vsub.f32 %v149_v49, %v1723_v61  ;;  %v296_v17 = vand.u32 4294901760, %v295_v0 }
  0x14   : > { %v1418_v16 = vpack.c.bf16 %v287_v47, %v280_v46  ;;  %v309_v19 = vsub.f32 %v1700_v50, %v308_v1  ;;  %v303_v26 = vand.u32 4294901760, %v302_v4  ;;  %v1346_v24 = vpack.c.bf16 %v289_v9, %v282_v8 }
  0x15   : > { %v249_v55 = vand.u32 4294901760, %v1676_v42  ;;  %v259_v5 = vand.u32 4294901760, %v1711_v57  ;;  %v269_v21 = vand.u32 4294901760, %v1743_v6  ;;  %v316_v49 = vsub.f32 %v1703_v51, %v315_v10 }
  0x16   : > { %1332 = vmatpush3.bf16.msra.mxu1 %v1619_v23  ;;  %1404 = vmatpush3.bf16.msra.mxu0 %v1619_v23  ;;  %v322_v22 = vand.u32 4294901760, %v1730_v62  ;;  %v329_v25 = vand.u32 4294901760, %v1735_v63  ;;  %v1779_v46 = vsub.f32 %v1629_v27, %v197_v33  ;;  %v1784_v47 = vsub.f32 %v1634_v28, %v200_v34 }
  0x17   : > { %1333 = vmatprep.subr.bf16.mxu1 %v1511_v3  ;;  %1405 = vmatprep.subr.bf16.mxu0 %v1511_v3  ;;  %v250_v2 = vsub.f32 %v1676_v42, %v249_v55  ;;  %v260_v38 = vsub.f32 %v1711_v57, %v259_v5  ;;  %v1421_v59 = vpack.c.bf16 %v301_v56, %v294_v53  ;;  %v310_v60 = vand.u32 4294901760, %v309_v19 }
  0x18   : > { %v336_v0 = vand.u32 4294901760, %v1757_v14  ;;  %v270_v8 = vsub.f32 %v1743_v6, %v269_v21  ;;  %v1349_v27 = vpack.c.bf16 %v303_v26, %v296_v17  ;;  %v317_v33 = vand.u32 4294901760, %v316_v49 }
  0x19   : > { %v251_v20 = vand.u32 4294901760, %v250_v2  ;;  %v343_v2 = vand.u32 4294901760, %v1764_v15  ;;  %v261_v4 = vand.u32 4294901760, %v260_v38  ;;  %v323_v9 = vsub.f32 %v1730_v62, %v322_v22 }
  0x1a   : > { %1335 = vmatpush3.bf16.msra.mxu1 %v1648_v32  ;;  %1407 = vmatpush3.bf16.msra.mxu0 %v1648_v32  ;;  %v330_v28 = vsub.f32 %v1735_v63, %v329_v25  ;;  %v1796_v34 = vsub.f32 %v1655_v35, %v203_v40  ;;  %v1801_v53 = vsub.f32 %v1662_v36, %v206_v44  ;;  %v350_v17 = vand.u32 4294901760, %v1779_v46 }
  0x1b   : > { %1336 = vmatprep.subr.bf16.mxu1 %v1511_v3  ;;  %1408 = vmatprep.subr.bf16.mxu0 %v1511_v3  ;;  %v337_v56 = vsub.f32 %v1757_v14, %v336_v0  ;;  %v271_v35 = vand.u32 4294901760, %v270_v8  ;;  %v1352_v36 = vpack.c.bf16 %v317_v33, %v310_v60  ;;  %v324_v40 = vand.u32 4294901760, %v323_v9 }
  0x1c   : > { %v331_v44 = vand.u32 4294901760, %v330_v28  ;;  %v351_v26 = vsub.f32 %v1779_v46, %v350_v17  ;;  %v364_v38 = vand.u32 4294901760, %v1796_v34 }
  0x1d   : > { %v338_v19 = vand.u32 4294901760, %v337_v56 }
  0x1e   : > { %1338 = vmatpush3.bf16.msra.mxu1 %v1684_v43  ;;  %1410 = vmatpush3.bf16.msra.mxu0 %v1684_v43  ;;  %v352_v49 = vand.u32 4294901760, %v351_v26 }
  0x1f   : > { %1339 = vmatprep.subr.bf16.mxu1 %v1511_v3  ;;  %1411 = vmatprep.subr.bf16.mxu0 %v1511_v3 }
  0x22   : > { %1341 = vmatpush3.bf16.msra.mxu1 %v1719_v58  ;;  %1413 = vmatpush3.bf16.msra.mxu0 %v1719_v58 }
  0x23   : > { %1342 = vmatprep.subr.bf16.mxu1 %v1511_v3  ;;  %1414 = vmatprep.subr.bf16.mxu0 %v1511_v3 }
  0x26   : > { %1344 = vmatpush3.bf16.msra.mxu1 %v1751_v7  ;;  %1416 = vmatpush3.bf16.msra.mxu0 %v1751_v7 }
  0x27   : > { %1345 = vmatprep.subr.bf16.mxu1 %v1511_v3  ;;  %1417 = vmatprep.subr.bf16.mxu0 %v1511_v3 }
  0x29   : > { %1108 = vmatmul.mubr.f32.vlgmr.msra.gmra.mrb[0].mxu1 %v251_v20  ;;  %1231 = vmatmul.mubr.f32.vlgmr.msra.gmra.mrb[0].mxu0 %v249_v55  ;;  %v1424_v55 = vpack.c.bf16 %v315_v10, %v308_v1  ;;  %v357_v1 = vand.u32 4294901760, %v1784_v47  ;;  %v1816_v10 = vsub.f32 %v1673_v41, %v209_v52  ;;  %v1355_v41 = vpack.c.bf16 %v331_v44, %v324_v40 }
  0x2a   : > { %1347 = vmatpush3.bf16.msra.mxu1 %v1346_v24  ;;  %1419 = vmatpush3.bf16.msra.mxu0 %v1418_v16  ;;  %v344_v16 = vsub.f32 %v1764_v15, %v343_v2  ;;  %v1427_v52 = vpack.c.bf16 %v329_v25, %v322_v22  ;;  %v1373_v40 = vpack.c.bf16 %v1667_v39, %v1664_v37 }
  0x2b   : > { %1348 = vmatprep.subr.bf16.mxu1 %v1511_v3  ;;  %1420 = vmatprep.subr.bf16.mxu0 %v1511_v3  ;;  %v378_v60 = vand.u32 4294901760, %v1816_v10  ;;  %v1433_v8 = vpack.c.bf16 %v357_v1, %v350_v17 }
  0x2c   : > { %1110 = vmatprep.mubr.msk.f32.mxu1 %vm1512_vm0, %v1513_v11  ;;  %1233 = vmatprep.mubr.msk.f32.mxu0 %vm1512_vm0, %v1513_v11  ;;  %v345_v20 = vand.u32 4294901760, %v344_v16 }
  0x2d   : > { %1111 = vmatmul.mubr.f32.gmra.mrb[2].mxu1 %v261_v4  ;;  %1234 = vmatmul.mubr.f32.gmra.mrb[2].mxu0 %v259_v5  ;;  %v1821_v5 = vsub.f32 %v1690_v45, %v212_v54  ;;  %v358_v45 = vsub.f32 %v1784_v47, %v357_v1  ;;  %v371_v54 = vand.u32 4294901760, %v1801_v53  ;;  %v379_v33 = vsub.f32 %v1816_v10, %v378_v60 }
  0x2e   : > { %1350 = vmatpush3.bf16.msra.mxu1 %v1349_v27  ;;  %1422 = vmatpush3.bf16.msra.mxu0 %v1421_v59  ;;  %v1358_v24 = vpack.c.bf16 %v345_v20, %v338_v19  ;;  %v365_v59 = vsub.f32 %v1796_v34, %v364_v38 }
  0x2f   : > { %1351 = vmatprep.subr.bf16.mxu1 %v1511_v3  ;;  %1423 = vmatprep.subr.bf16.mxu0 %v1511_v3  ;;  %v359_v22 = vand.u32 4294901760, %v358_v45  ;;  %v372_v25 = vsub.f32 %v1801_v53, %v371_v54  ;;  %v385_v4 = vand.u32 4294901760, %v1821_v5  ;;  %v380_v56 = vand.u32 4294901760, %v379_v33 }
  0x30   : > { %1113 = vmatprep.mubr.msk.f32.mxu1 %vm1512_vm0, %v1513_v11  ;;  %1236 = vmatprep.mubr.msk.f32.mxu0 %vm1512_vm0, %v1513_v11  ;;  %v366_v27 = vand.u32 4294901760, %v365_v59 }
  0x31   : > { %1114 = vmatmul.mubr.f32.gmra.mrb[4].mxu1 %v271_v35  ;;  %1237 = vmatmul.mubr.f32.gmra.mrb[4].mxu0 %v269_v21  ;;  %v1430_v21 = vpack.c.bf16 %v343_v2, %v336_v0  ;;  %v1361_v0 = vpack.c.bf16 %v359_v22, %v352_v49  ;;  %v373_v2 = vand.u32 4294901760, %v372_v25  ;;  %v386_v9 = vsub.f32 %v1821_v5, %v385_v4 }
  0x32   : > { %1353 = vmatpush3.bf16.msra.mxu1 %v1352_v36  ;;  %1425 = vmatpush3.bf16.msra.mxu0 %v1424_v55  ;;  %v1436_v55 = vpack.c.bf16 %v371_v54, %v364_v38  ;;  %v1439_v35 = vpack.c.bf16 %v385_v4, %v378_v60  ;;  %v1370_v36 = vpack.c.bf16 %v1640_v31, %v1636_v29 }
  0x33   : > { %1354 = vmatprep.subr.bf16.mxu1 %v1511_v3  ;;  %1426 = vmatprep.subr.bf16.mxu0 %v1511_v3  ;;  %v1364_v28 = vpack.c.bf16 %v373_v2, %v366_v27  ;;  %v387_v16 = vand.u32 4294901760, %v386_v9  ;;  %v1382_v29 = vpack.c.bf16 %v1764_v15, %v1757_v14  ;;  %v1391_v31 = vpack.c.bf16 %v1821_v5, %v1816_v10 }
  0x34   : > { %1148 = vmatprep.mubr.msk.f32.mxu1 %vm1512_vm0, %v1513_v11  ;;  %1271 = vmatprep.mubr.msk.f32.mxu0 %vm1512_vm0, %v1513_v11 }
  0x35   : > { %v1367_v17 = vpack.c.bf16 %v387_v16, %v380_v56 }
  0x36   : > { %1356 = vmatpush3.bf16.msra.mxu1 %v1355_v41  ;;  %1428 = vmatpush3.bf16.msra.mxu0 %v1427_v52 }
  0x37   : > { %1357 = vmatprep.subr.bf16.mxu1 %v1511_v3  ;;  %1429 = vmatprep.subr.bf16.mxu0 %v1511_v3 }
  0x3a   : > { %1359 = vmatpush3.bf16.msra.mxu1 %v1358_v24  ;;  %1431 = vmatpush3.bf16.msra.mxu0 %v1430_v21 }
  0x3b   : > { %1360 = vmatprep.subr.bf16.mxu1 %v1511_v3  ;;  %1432 = vmatprep.subr.bf16.mxu0 %v1511_v3 }
  0x3e   : > { %1362 = vmatpush3.bf16.msra.mxu1 %v1361_v0  ;;  %1434 = vmatpush3.bf16.msra.mxu0 %v1433_v8 }
  0x3f   : > { %1363 = vmatprep.subr.bf16.mxu1 %v1511_v3  ;;  %1435 = vmatprep.subr.bf16.mxu0 %v1511_v3 }
  0x42   : > { %1365 = vmatpush3.bf16.msra.mxu1 %v1364_v28  ;;  %1437 = vmatpush3.bf16.msra.mxu0 %v1436_v55 }
  0x43   : > { %1366 = vmatprep.subr.bf16.mxu1 %v1511_v3  ;;  %1438 = vmatprep.subr.bf16.mxu0 %v1511_v3 }
  0x46   : > { %1368 = vmatpush3.bf16.msra.mxu1 %v1367_v17  ;;  %1440 = vmatpush3.bf16.msra.mxu0 %v1439_v35 }
  0x47   : > { %1369 = vmatprep.subr.bf16.mxu1 %v1511_v3  ;;  %1441 = vmatprep.subr.bf16.mxu0 %v1511_v3 }
  0x49   : > { %1149 = vmatmul.mubr.f32.vlgmr.msra.gmra.mrb[0].mxu1 %v1638_v30  ;;  %1272 = vmatmul.mubr.f32.vlgmr.msra.gmra.mrb[0].mxu0 %v1638_v30 }
  0x4a   : > { %1371 = vmatpush3.bf16.msra.mxu1 %v1370_v36  ;;  %1443 = vmatpush3.bf16.msra.mxu0 %v1565_v12  ;;  %v1376_v12 = vpack.c.bf16 %v1703_v51, %v1700_v50 }
  0x4b   : > { %1372 = vmatprep.subr.bf16.mxu1 %v1511_v3  ;;  %1444 = vmatprep.subr.bf16.mxu0 %v1511_v3 }
  0x4c   : > { %1151 = vmatprep.mubr.msk.f32.mxu1 %vm1512_vm0, %v1513_v11  ;;  %1274 = vmatprep.mubr.msk.f32.mxu0 %vm1512_vm0, %v1513_v11 }
  0x4d   : > { %1152 = vmatmul.mubr.f32.gmra.mrb[2].mxu1 %v1696_v48  ;;  %1275 = vmatmul.mubr.f32.gmra.mrb[2].mxu0 %v1696_v48 }
  0x4e   : > { %1374 = vmatpush3.bf16.msra.mxu1 %v1373_v40  ;;  %1446 = vmatpush3.bf16.msra.mxu0 %v1569_v13  ;;  %v1379_v13 = vpack.c.bf16 %v1735_v63, %v1730_v62 }
  0x4f   : > { %1375 = vmatprep.subr.bf16.mxu1 %v1511_v3  ;;  %1447 = vmatprep.subr.bf16.mxu0 %v1511_v3 }
  0x50   : > { %1154 = vmatprep.mubr.msk.f32.mxu1 %vm1512_vm0, %v1513_v11  ;;  %1277 = vmatprep.mubr.msk.f32.mxu0 %vm1512_vm0, %v1513_v11 }
  0x51   : > { %1155 = vmatmul.mubr.f32.gmra.mrb[4].mxu1 %v1723_v61  ;;  %1278 = vmatmul.mubr.f32.gmra.mrb[4].mxu0 %v1723_v61 }
  0x52   : > { %1377 = vmatpush3.bf16.msra.mxu1 %v1376_v12  ;;  %1449 = vmatpush3.bf16.msra.mxu0 %v1589_v18  ;;  %v1385_v18 = vpack.c.bf16 %v1784_v47, %v1779_v46 }
  0x53   : > { %1378 = vmatprep.subr.bf16.mxu1 %v1511_v3  ;;  %1450 = vmatprep.subr.bf16.mxu0 %v1511_v3 }
  0x54   : > { %1189 = vmatprep.mubr.msk.f32.mxu1 %vm1512_vm0, %v1513_v11  ;;  %1312 = vmatprep.mubr.msk.f32.mxu0 %vm1512_vm0, %v1513_v11 }
  0x56   : > { %1380 = vmatpush3.bf16.msra.mxu1 %v1379_v13  ;;  %1452 = vmatpush3.bf16.msra.mxu0 %v1619_v23  ;;  %v1388_v23 = vpack.c.bf16 %v1801_v53, %v1796_v34 }
  0x57   : > { %1381 = vmatprep.subr.bf16.mxu1 %v1511_v3  ;;  %1453 = vmatprep.subr.bf16.mxu0 %v1511_v3 }
  0x5a   : > { %1383 = vmatpush3.bf16.msra.mxu1 %v1382_v29  ;;  %1455 = vmatpush3.bf16.msra.mxu0 %v1648_v32 }
  0x5b   : > { %1384 = vmatprep.subr.bf16.mxu1 %v1511_v3  ;;  %1456 = vmatprep.subr.bf16.mxu0 %v1511_v3 }
  0x5e   : > { %1386 = vmatpush3.bf16.msra.mxu1 %v1385_v18  ;;  %1458 = vmatpush3.bf16.msra.mxu0 %v1684_v43 }
  0x5f   : > { %1387 = vmatprep.subr.bf16.mxu1 %v1511_v3  ;;  %1459 = vmatprep.subr.bf16.mxu0 %v1511_v3 }
  0x62   : > { %1389 = vmatpush3.bf16.msra.mxu1 %v1388_v23  ;;  %1461 = vmatpush3.bf16.msra.mxu0 %v1719_v58 }
  0x63   : > { %1390 = vmatprep.subr.bf16.mxu1 %v1511_v3  ;;  %1462 = vmatprep.subr.bf16.mxu0 %v1511_v3 }
  0x66   : > { %1392 = vmatpush3.bf16.msra.mxu1 %v1391_v31  ;;  %1464 = vmatpush3.bf16.msra.mxu0 %v1751_v7 }
  0x69   : > { %1190 = vmatmul.mubr.f32.vlgmr.msra.gmra.mrb[0].mxu1 %v1676_v42  ;;  %1313 = vmatmul.mubr.f32.vlgmr.msra.gmra.mrb[0].mxu0 %v1638_v30 }
  0x6a   : > { %1192 = vmatprep.mubr.msk.f32.mxu1 %vm1512_vm0, %v1513_v11  ;;  %1315 = vmatprep.mubr.msk.f32.mxu0 %vm1512_vm0, %v1513_v11 }
  0x6d   : > { %1193 = vmatmul.mubr.f32.gmra.mrb[2].mxu1 %v1711_v57  ;;  %1316 = vmatmul.mubr.f32.gmra.mrb[2].mxu0 %v1696_v48 }
  0x6e   : > { %1195 = vmatprep.mubr.msk.f32.mxu1 %vm1512_vm0, %v1513_v11  ;;  %1318 = vmatprep.mubr.msk.f32.mxu0 %vm1512_vm0, %v1513_v11 }
  0x71   : > { %1196 = vmatmul.mubr.f32.gmra.mrb[4].mxu1 %v1743_v6  ;;  %1319 = vmatmul.mubr.f32.gmra.mrb[4].mxu0 %v1723_v61 }
 0x13c   : > { %v540_v3 = vpop.f32.mrb[0].mxu1  ;;  %v877_v30 = vpop.f32.mrb[0].mxu0 }
 0x13d   : > { %v1465_v32 = vadd.f32 %v877_v30, %v540_v3  ;;  %v1191_v37 = vpop.f32.mrb[1].mxu1  ;;  %v1314_v39 = vpop.f32.mrb[1].mxu0 }
 0x13f   : > { %893 = vst [vmem:[%s145_s24] sm:$0xff] %v1465_v32 }
 0x140   : > { %v547_v42 = vpop.f32.mrb[2].mxu1  ;;  %v883_v43 = vpop.f32.mrb[2].mxu0 }
 0x141   : > { %v1466_v48 = vadd.f32 %v883_v43, %v547_v42  ;;  %v1194_v50 = vpop.f32.mrb[3].mxu1  ;;  %v1317_v11 = vpop.f32.mrb[3].mxu0 }
 0x143   : > { %894 = vst [vmem:[%s145_s24 + $0x8] sm:$0xff] %v1466_v48 }
 0x144   : > { %v554_v51 = vpop.f32.mrb[4].mxu1  ;;  %v889_v57 = vpop.f32.mrb[4].mxu0 }
 0x145   : > { %v1467_v58 = vadd.f32 %v889_v57, %v554_v51  ;;  %v1197_v61 = vpop.f32.mrb[5].mxu1  ;;  %v1320_v62 = vpop.f32.mrb[5].mxu0 }
 0x147   : > { %895 = vst [vmem:[%s145_s24 + $0x10] sm:$0xff] %v1467_v58 }
 0x148 PF: > { %s12_s9 = sadd.s32 1, %s1509_s9  }
 0x149   : > { %p9_p4 = scmp.ge.s32.totalorder %s12_s9, 4  }
 0x14b   :  { %11 = sbr.rel (!%p9_p4) target bundleno = 1 (0x1), region = 58 }

</bundles_post_ra>
